<compile_context>
chip_gen: v7x
topology: tpu7x:2x2x1
jax: 0.10.0
libtpu: 0.0.40
codegen_flags: <defaults>
</compile_context>

<pallas_src>
import functools

import jax
import jax.numpy as jnp
import numpy as np
from jax.experimental import pallas as pl
from jax.experimental.pallas import tpu as pltpu


# ----------------------------------------------------------------------------
# Fused kernel: conv1+BN+ReLU -> conv2+BN+ReLU -> conv3+bias, all in VMEM.
# Layout inside the kernel: (channels, patches), patches on lanes.
# ----------------------------------------------------------------------------
def _conv_stem_kernel(cols_ref, mask_ref, w1_ref, b1_ref, w2_ref, b2_ref,
                      w3_ref, b3_ref, o_ref):
    C2 = w2_ref.shape[1]
    TP = cols_ref.shape[-1]          # patches handled by this grid step (lane dim)

    w1 = w1_ref[...]                 # (C1, K1)  BN1 scale pre-folded into rows
    b1 = b1_ref[...]                 # (C1, 1)
    row_ok = mask_ref[0:1, :]        # (1, TP)  1.0 where oh2 > 0 (conv2 top padding)
    col_ok = mask_ref[1:2, :]        # (1, TP)  1.0 where ow2 > 0 (conv2 left padding)

    acc2 = jnp.zeros((C2, TP), jnp.float32)
    for kh in range(3):              # conv2 taps, fully unrolled (static)
        for kw in range(3):
            t = kh * 3 + kw
            # conv1 + BN1 + ReLU evaluated exactly at the conv1-output position that
            # conv2's tap (kh, kw) needs, lane-dense over patches.
            y1 = jnp.dot(w1, cols_ref[0, t],
                         preferred_element_type=jnp.float32) + b1
            y1 = jnp.maximum(y1, 0.0)
            # conv2 zero padding: taps that fall outside the conv1 output grid are 0.
            if kh == 0:
                y1 = y1 * row_ok
            if kw == 0:
                y1 = y1 * col_ok
            acc2 = acc2 + jnp.dot(w2_ref[t], y1,
                                  preferred_element_type=jnp.float32)

    y2 = jnp.maximum(acc2 + b2_ref[...], 0.0)                 # conv2 + BN2 + ReLU
    y3 = jnp.dot(w3_ref[...], y2,
                 preferred_element_type=jnp.float32) + b3_ref[...]
    o_ref[0] = y3.astype(o_ref.dtype)                         # (E, TP) lane-dense store


# ----------------------------------------------------------------------------
# Plain-JAX glue: per-(conv2-tap) conv1 patch columns from the raw input.
# cols[b, kh*3+kw, (kh'*3+kw')*C + c, oh2*W2+ow2] =
#     X_padded[b, c, 4*oh2 + 2*kh + kh' - 3, 4*ow2 + 2*kw + kw' - 3]
# i.e. exactly the conv1 receptive field of conv1-output position
# (2*oh2 + kh - 1, 2*ow2 + kw - 1).  Pure data movement on the tiny raw input.
# ----------------------------------------------------------------------------
def _build_tap_cols(x_nchw, H2, W2):
    B, C, H, W = x_nchw.shape
    xp = jnp.pad(x_nchw, ((0, 0), (0, 0), (3, 0), (3, 0)))
    taps = []
    for kh in range(3):
        for kw in range(3):
            inner = []
            for kh2 in range(3):
                for kw2 in range(3):
                    r0 = 2 * kh + kh2
                    c0 = 2 * kw + kw2
                    sl = jax.lax.slice(
                        xp, (0, 0, r0, c0),
                        (B, C, r0 + 4 * (H2 - 1) + 1, c0 + 4 * (W2 - 1) + 1),
                        (1, 1, 4, 4))                        # (B, C, H2, W2)
                    inner.append(sl)
            col = jnp.stack(inner, axis=1)                   # (B, 9, C, H2, W2)
            taps.append(col.reshape(B, 9 * C, H2 * W2))      # K order (kh', kw', c)
    return jnp.stack(taps, axis=1)                           # (B, 9, 9*C, P)


def _pick_patch_tile(P, target=1024):
    """Largest multiple-of-128 divisor of P up to `target`, else full extent."""
    best = P
    for t in (128, 256, 512, 1024):
        if t <= target and P % t == 0:
            best = t
    return best


# ----------------------------------------------------------------------------
# Parameters (deterministic synthetic init) + BN folding (inference mode).
# ----------------------------------------------------------------------------
def init_params(key, embed_dim=32):
    # The PyTorch module hardcodes input_dim=3 for the stem.
    c_in, c1, c2 = 3, embed_dim // 8, embed_dim // 4
    ks = jax.random.split(key, 12)
    return dict(
        w1=jax.random.normal(ks[0], (c1, c_in, 3, 3), jnp.float32) * 0.2,
        g1=1.0 + 0.1 * jax.random.normal(ks[1], (c1,), jnp.float32),
        be1=0.1 * jax.random.normal(ks[2], (c1,), jnp.float32),
        m1=0.1 * jax.random.normal(ks[3], (c1,), jnp.float32),
        v1=jax.random.uniform(ks[4], (c1,), jnp.float32, 0.5, 1.5),
        w2=jax.random.normal(ks[5], (c2, c1, 3, 3), jnp.float32) * 0.2,
        g2=1.0 + 0.1 * jax.random.normal(ks[6], (c2,), jnp.float32),
        be2=0.1 * jax.random.normal(ks[7], (c2,), jnp.float32),
        m2=0.1 * jax.random.normal(ks[8], (c2,), jnp.float32),
        v2=jax.random.uniform(ks[9], (c2,), jnp.float32, 0.5, 1.5),
        w3=jax.random.normal(ks[10], (embed_dim, c2, 1, 1), jnp.float32) * 0.2,
        b3=0.1 * jax.random.normal(ks[11], (embed_dim,), jnp.float32),
    )


def fold_params(raw, eps=1e-5, compute_dtype=jnp.float32):
    """Fold eval-mode BatchNorm into the transposed weight matrices (runs once)."""
    # TODO(synk): training-mode BatchNorm (batch statistics) is not reproduced here.
    s1 = raw["g1"] / jnp.sqrt(raw["v1"] + eps)
    s2 = raw["g2"] / jnp.sqrt(raw["v2"] + eps)
    C1, C2, E = raw["w1"].shape[0], raw["w2"].shape[0], raw["w3"].shape[0]
    w1t = jnp.transpose(raw["w1"], (0, 2, 3, 1)).reshape(C1, -1) * s1[:, None]
    w2t = jnp.transpose(raw["w2"], (2, 3, 0, 1)).reshape(9, C2, C1) * s2[None, :, None]
    w3t = raw["w3"][:, :, 0, 0]
    return dict(
        w1=w1t.astype(compute_dtype),
        b1=(raw["be1"] - raw["m1"] * s1).reshape(C1, 1).astype(jnp.float32),
        w2=w2t.astype(compute_dtype),
        b2=(raw["be2"] - raw["m2"] * s2).reshape(C2, 1).astype(jnp.float32),
        w3=w3t.astype(compute_dtype),
        b3=raw["b3"].reshape(E, 1).astype(jnp.float32),
    )


# ----------------------------------------------------------------------------
# ConvStem forward (single fused Pallas call)
# ----------------------------------------------------------------------------
def conv_stem_forward(x_nchw, p):
    B, C, H, W = x_nchw.shape
    assert H % 4 == 0 and W % 4 == 0
    H2, W2 = H // 4, W // 4
    P = H2 * W2
    E = p["w3"].shape[0]
    K1 = p["w1"].shape[1]

    cols = _build_tap_cols(x_nchw, H2, W2).astype(p["w1"].dtype)   # (B, 9, K1, P)
    pid = jnp.arange(P, dtype=jnp.int32)
    masks = jnp.stack([(pid // W2) > 0, (pid % W2) > 0]).astype(jnp.float32)  # (2, P)

    TP = _pick_patch_tile(P)
    grid = (B, P // TP)

    out = pl.pallas_call(
        _conv_stem_kernel,
        out_shape=jax.ShapeDtypeStruct((B, E, P), jnp.float32),
        grid=grid,
        in_specs=[
            pl.BlockSpec((1, 9, K1, TP), lambda b, j: (b, 0, 0, j)),
            pl.BlockSpec((2, TP), lambda b, j: (0, j)),
            pl.BlockSpec(p["w1"].shape, lambda b, j: (0, 0)),
            pl.BlockSpec(p["b1"].shape, lambda b, j: (0, 0)),
            pl.BlockSpec(p["w2"].shape, lambda b, j: (0, 0, 0)),
            pl.BlockSpec(p["b2"].shape, lambda b, j: (0, 0)),
            pl.BlockSpec(p["w3"].shape, lambda b, j: (0, 0)),
            pl.BlockSpec(p["b3"].shape, lambda b, j: (0, 0)),
        ],
        out_specs=pl.BlockSpec((1, E, TP), lambda b, j: (b, 0, j)),
        compiler_params=pltpu.CompilerParams(
            dimension_semantics=("parallel", "parallel")),
    )(cols, masks, p["w1"], p["b1"], p["w2"], p["b2"], p["w3"], p["b3"])

    # PyTorch: x.flatten(2).transpose(1, 2)  -> (B, num_patches, embed_dim)
    return jnp.transpose(out, (0, 2, 1))


# ----------------------------------------------------------------------------
# Pure-JAX reference (lax conv) for correctness check
# ----------------------------------------------------------------------------
def reference_forward(x_nchw, raw, eps=1e-5):
    def conv(x, w, stride, pad):
        return jax.lax.conv_general_dilated(
            x, w, (stride, stride), ((pad, pad), (pad, pad)),
            dimension_numbers=("NCHW", "OIHW", "NCHW"))

    def bn(x, g, b, m, v):
        rs = lambda a: a[None, :, None, None]
        return (x - rs(m)) / jnp.sqrt(rs(v) + eps) * rs(g) + rs(b)

    y = jax.nn.relu(bn(conv(x_nchw, raw["w1"], 2, 1),
                       raw["g1"], raw["be1"], raw["m1"], raw["v1"]))
    y = jax.nn.relu(bn(conv(y, raw["w2"], 2, 1),
                       raw["g2"], raw["be2"], raw["m2"], raw["v2"]))
    y = conv(y, raw["w3"], 1, 0) + raw["b3"][None, :, None, None]
    B, E, H, W = y.shape
    return jnp.transpose(y.reshape(B, E, H * W), (0, 2, 1))


if __name__ == "__main__":
    key = jax.random.PRNGKey(0)
    k_x, k_p = jax.random.split(key)

    B, C, HW, embed_dim = 2, 3, 16, 32          # img_size=16, patch_size=4, embed_dim=32
    x = jax.random.normal(k_x, (B, C, HW, HW), jnp.float32)
    raw = init_params(k_p, embed_dim=embed_dim)
    folded = fold_params(raw)                    # f32; use compute_dtype=bf16 on v6e/v7x

    fwd = jax.jit(conv_stem_forward)
    out = jax.block_until_ready(fwd(x, folded))
    assert out.shape == (B, (HW // 4) * (HW // 4), embed_dim), out.shape

    ref = jax.block_until_ready(reference_forward(x, raw))
    np.testing.assert_allclose(np.asarray(out), np.asarray(ref), atol=2e-4, rtol=2e-4)

    print("KERNEL_OK")
</pallas_src>

<mosaic_0001>
module attributes {stable_mosaic.version = 11 : i64} {
  func.func @_conv_stem_kernel(%arg0: i32, %arg1: i32, %arg2: memref<1x9x27x16xf32, #tpu.memory_space<vmem>>, %arg3: memref<2x16xf32, #tpu.memory_space<vmem>>, %arg4: memref<4x27xf32, #tpu.memory_space<vmem>>, %arg5: memref<4x1xf32, #tpu.memory_space<vmem>>, %arg6: memref<9x8x4xf32, #tpu.memory_space<vmem>>, %arg7: memref<8x1xf32, #tpu.memory_space<vmem>>, %arg8: memref<32x8xf32, #tpu.memory_space<vmem>>, %arg9: memref<32x1xf32, #tpu.memory_space<vmem>>, %arg10: memref<1x32x16xf32, #tpu.memory_space<vmem>>) attributes {dimension_semantics = [#tpu.dimension_semantics<parallel>, #tpu.dimension_semantics<parallel>], iteration_bounds = array<i64: 2, 1>, scalar_prefetch = 0 : i64, scratch_operands = 0 : i64, tpu.core_type = #tpu.core_type<tc>, window_params = [{transform_indices = @transform_0, window_bounds = array<i64: 1, 9, 27, 16>}, {transform_indices = @transform_1, window_bounds = array<i64: 2, 16>}, {pipeline_mode = #tpu.pipeline_mode<synchronous>, transform_indices = @transform_2, window_bounds = array<i64: 4, 27>}, {pipeline_mode = #tpu.pipeline_mode<synchronous>, transform_indices = @transform_3, window_bounds = array<i64: 4, 1>}, {pipeline_mode = #tpu.pipeline_mode<synchronous>, transform_indices = @transform_4, window_bounds = array<i64: 9, 8, 4>}, {pipeline_mode = #tpu.pipeline_mode<synchronous>, transform_indices = @transform_5, window_bounds = array<i64: 8, 1>}, {pipeline_mode = #tpu.pipeline_mode<synchronous>, transform_indices = @transform_6, window_bounds = array<i64: 32, 8>}, {pipeline_mode = #tpu.pipeline_mode<synchronous>, transform_indices = @transform_7, window_bounds = array<i64: 32, 1>}, {transform_indices = @transform_8, window_bounds = array<i64: 1, 32, 16>}]} {
    %c0 = arith.constant 0 : index
    %c0_0 = arith.constant 0 : index
    %0 = vector.load %arg4[%c0, %c0_0] : memref<4x27xf32, #tpu.memory_space<vmem>>, vector<4x27xf32>
    %c0_1 = arith.constant 0 : index
    %c0_2 = arith.constant 0 : index
    %1 = vector.load %arg5[%c0_1, %c0_2] : memref<4x1xf32, #tpu.memory_space<vmem>>, vector<4x1xf32>
    %c0_3 = arith.constant 0 : index
    %c0_4 = arith.constant 0 : index
    %2 = vector.load %arg3[%c0_3, %c0_4] : memref<2x16xf32, #tpu.memory_space<vmem>>, vector<1x16xf32>
    %c1 = arith.constant 1 : index
    %c0_5 = arith.constant 0 : index
    %3 = vector.load %arg3[%c1, %c0_5] : memref<2x16xf32, #tpu.memory_space<vmem>>, vector<1x16xf32>
    %cst = arith.constant 0.000000e+00 : f32
    %4 = vector.broadcast %cst : f32 to vector<8x16xf32>
    %c0_6 = arith.constant 0 : index
    %c0_7 = arith.constant 0 : index
    %c0_8 = arith.constant 0 : index
    %c0_9 = arith.constant 0 : index
    %5 = vector.load %arg2[%c0_6, %c0_7, %c0_8, %c0_9] : memref<1x9x27x16xf32, #tpu.memory_space<vmem>>, vector<1x1x27x16xf32>
    %6 = vector.shape_cast %5 : vector<1x1x27x16xf32> to vector<27x16xf32>
    %cst_10 = arith.constant dense<0.000000e+00> : vector<4x16xf32>
    %7 = tpu.matmul %0, %6, %cst_10 {dimension_numbers = #tpu.dot_dimension_numbers<[1], [0], [0], [1], [0, 0, 1, 1], [], []>} : vector<4x27xf32>, vector<27x16xf32>, vector<4x16xf32> -> vector<4x16xf32>
    %8 = vector.broadcast %1 : vector<4x1xf32> to vector<4x16xf32>
    %9 = arith.addf %7, %8 : vector<4x16xf32>
    %cst_11 = arith.constant 0.000000e+00 : f32
    %10 = vector.broadcast %cst_11 : f32 to vector<4x16xf32>
    %11 = arith.maximumf %9, %10 : vector<4x16xf32>
    %12 = vector.broadcast %2 : vector<1x16xf32> to vector<4x16xf32>
    %13 = arith.mulf %11, %12 : vector<4x16xf32>
    %14 = vector.broadcast %3 : vector<1x16xf32> to vector<4x16xf32>
    %15 = arith.mulf %13, %14 : vector<4x16xf32>
    %c0_12 = arith.constant 0 : index
    %c0_13 = arith.constant 0 : index
    %c0_14 = arith.constant 0 : index
    %16 = vector.load %arg6[%c0_12, %c0_13, %c0_14] : memref<9x8x4xf32, #tpu.memory_space<vmem>>, vector<1x8x4xf32>
    %17 = vector.shape_cast %16 : vector<1x8x4xf32> to vector<8x4xf32>
    %cst_15 = arith.constant dense<0.000000e+00> : vector<8x16xf32>
    %18 = tpu.matmul %17, %15, %cst_15 {dimension_numbers = #tpu.dot_dimension_numbers<[1], [0], [0], [1], [0, 0, 1, 1], [], []>} : vector<8x4xf32>, vector<4x16xf32>, vector<8x16xf32> -> vector<8x16xf32>
    %19 = arith.addf %4, %18 : vector<8x16xf32>
    %c0_16 = arith.constant 0 : index
    %c1_17 = arith.constant 1 : index
    %c0_18 = arith.constant 0 : index
    %c0_19 = arith.constant 0 : index
    %20 = vector.load %arg2[%c0_16, %c1_17, %c0_18, %c0_19] : memref<1x9x27x16xf32, #tpu.memory_space<vmem>>, vector<1x1x27x16xf32>
    %21 = vector.shape_cast %20 : vector<1x1x27x16xf32> to vector<27x16xf32>
    %cst_20 = arith.constant dense<0.000000e+00> : vector<4x16xf32>
    %22 = tpu.matmul %0, %21, %cst_20 {dimension_numbers = #tpu.dot_dimension_numbers<[1], [0], [0], [1], [0, 0, 1, 1], [], []>} : vector<4x27xf32>, vector<27x16xf32>, vector<4x16xf32> -> vector<4x16xf32>
    %23 = vector.broadcast %1 : vector<4x1xf32> to vector<4x16xf32>
    %24 = arith.addf %22, %23 : vector<4x16xf32>
    %cst_21 = arith.constant 0.000000e+00 : f32
    %25 = vector.broadcast %cst_21 : f32 to vector<4x16xf32>
    %26 = arith.maximumf %24, %25 : vector<4x16xf32>
    %27 = vector.broadcast %2 : vector<1x16xf32> to vector<4x16xf32>
    %28 = arith.mulf %26, %27 : vector<4x16xf32>
    %c1_22 = arith.constant 1 : index
    %c0_23 = arith.constant 0 : index
    %c0_24 = arith.constant 0 : index
    %29 = vector.load %arg6[%c1_22, %c0_23, %c0_24] : memref<9x8x4xf32, #tpu.memory_space<vmem>>, vector<1x8x4xf32>
    %30 = vector.shape_cast %29 : vector<1x8x4xf32> to vector<8x4xf32>
    %cst_25 = arith.constant dense<0.000000e+00> : vector<8x16xf32>
    %31 = tpu.matmul %30, %28, %cst_25 {dimension_numbers = #tpu.dot_dimension_numbers<[1], [0], [0], [1], [0, 0, 1, 1], [], []>} : vector<8x4xf32>, vector<4x16xf32>, vector<8x16xf32> -> vector<8x16xf32>
    %32 = arith.addf %19, %31 : vector<8x16xf32>
    %c0_26 = arith.constant 0 : index
    %c2 = arith.constant 2 : index
    %c0_27 = arith.constant 0 : index
    %c0_28 = arith.constant 0 : index
    %33 = vector.load %arg2[%c0_26, %c2, %c0_27, %c0_28] : memref<1x9x27x16xf32, #tpu.memory_space<vmem>>, vector<1x1x27x16xf32>
    %34 = vector.shape_cast %33 : vector<1x1x27x16xf32> to vector<27x16xf32>
    %cst_29 = arith.constant dense<0.000000e+00> : vector<4x16xf32>
    %35 = tpu.matmul %0, %34, %cst_29 {dimension_numbers = #tpu.dot_dimension_numbers<[1], [0], [0], [1], [0, 0, 1, 1], [], []>} : vector<4x27xf32>, vector<27x16xf32>, vector<4x16xf32> -> vector<4x16xf32>
    %36 = vector.broadcast %1 : vector<4x1xf32> to vector<4x16xf32>
    %37 = arith.addf %35, %36 : vector<4x16xf32>
    %cst_30 = arith.constant 0.000000e+00 : f32
    %38 = vector.broadcast %cst_30 : f32 to vector<4x16xf32>
    %39 = arith.maximumf %37, %38 : vector<4x16xf32>
    %40 = vector.broadcast %2 : vector<1x16xf32> to vector<4x16xf32>
    %41 = arith.mulf %39, %40 : vector<4x16xf32>
    %c2_31 = arith.constant 2 : index
    %c0_32 = arith.constant 0 : index
    %c0_33 = arith.constant 0 : index
    %42 = vector.load %arg6[%c2_31, %c0_32, %c0_33] : memref<9x8x4xf32, #tpu.memory_space<vmem>>, vector<1x8x4xf32>
    %43 = vector.shape_cast %42 : vector<1x8x4xf32> to vector<8x4xf32>
    %cst_34 = arith.constant dense<0.000000e+00> : vector<8x16xf32>
    %44 = tpu.matmul %43, %41, %cst_34 {dimension_numbers = #tpu.dot_dimension_numbers<[1], [0], [0], [1], [0, 0, 1, 1], [], []>} : vector<8x4xf32>, vector<4x16xf32>, vector<8x16xf32> -> vector<8x16xf32>
    %45 = arith.addf %32, %44 : vector<8x16xf32>
    %c0_35 = arith.constant 0 : index
    %c3 = arith.constant 3 : index
    %c0_36 = arith.constant 0 : index
    %c0_37 = arith.constant 0 : index
    %46 = vector.load %arg2[%c0_35, %c3, %c0_36, %c0_37] : memref<1x9x27x16xf32, #tpu.memory_space<vmem>>, vector<1x1x27x16xf32>
    %47 = vector.shape_cast %46 : vector<1x1x27x16xf32> to vector<27x16xf32>
    %cst_38 = arith.constant dense<0.000000e+00> : vector<4x16xf32>
    %48 = tpu.matmul %0, %47, %cst_38 {dimension_numbers = #tpu.dot_dimension_numbers<[1], [0], [0], [1], [0, 0, 1, 1], [], []>} : vector<4x27xf32>, vector<27x16xf32>, vector<4x16xf32> -> vector<4x16xf32>
    %49 = vector.broadcast %1 : vector<4x1xf32> to vector<4x16xf32>
    %50 = arith.addf %48, %49 : vector<4x16xf32>
    %cst_39 = arith.constant 0.000000e+00 : f32
    %51 = vector.broadcast %cst_39 : f32 to vector<4x16xf32>
    %52 = arith.maximumf %50, %51 : vector<4x16xf32>
    %53 = vector.broadcast %3 : vector<1x16xf32> to vector<4x16xf32>
    %54 = arith.mulf %52, %53 : vector<4x16xf32>
    %c3_40 = arith.constant 3 : index
    %c0_41 = arith.constant 0 : index
    %c0_42 = arith.constant 0 : index
    %55 = vector.load %arg6[%c3_40, %c0_41, %c0_42] : memref<9x8x4xf32, #tpu.memory_space<vmem>>, vector<1x8x4xf32>
    %56 = vector.shape_cast %55 : vector<1x8x4xf32> to vector<8x4xf32>
    %cst_43 = arith.constant dense<0.000000e+00> : vector<8x16xf32>
    %57 = tpu.matmul %56, %54, %cst_43 {dimension_numbers = #tpu.dot_dimension_numbers<[1], [0], [0], [1], [0, 0, 1, 1], [], []>} : vector<8x4xf32>, vector<4x16xf32>, vector<8x16xf32> -> vector<8x16xf32>
    %58 = arith.addf %45, %57 : vector<8x16xf32>
    %c0_44 = arith.constant 0 : index
    %c4 = arith.constant 4 : index
    %c0_45 = arith.constant 0 : index
    %c0_46 = arith.constant 0 : index
    %59 = vector.load %arg2[%c0_44, %c4, %c0_45, %c0_46] : memref<1x9x27x16xf32, #tpu.memory_space<vmem>>, vector<1x1x27x16xf32>
    %60 = vector.shape_cast %59 : vector<1x1x27x16xf32> to vector<27x16xf32>
    %cst_47 = arith.constant dense<0.000000e+00> : vector<4x16xf32>
    %61 = tpu.matmul %0, %60, %cst_47 {dimension_numbers = #tpu.dot_dimension_numbers<[1], [0], [0], [1], [0, 0, 1, 1], [], []>} : vector<4x27xf32>, vector<27x16xf32>, vector<4x16xf32> -> vector<4x16xf32>
    %62 = vector.broadcast %1 : vector<4x1xf32> to vector<4x16xf32>
    %63 = arith.addf %61, %62 : vector<4x16xf32>
    %cst_48 = arith.constant 0.000000e+00 : f32
    %64 = vector.broadcast %cst_48 : f32 to vector<4x16xf32>
    %65 = arith.maximumf %63, %64 : vector<4x16xf32>
    %c4_49 = arith.constant 4 : index
    %c0_50 = arith.constant 0 : index
    %c0_51 = arith.constant 0 : index
    %66 = vector.load %arg6[%c4_49, %c0_50, %c0_51] : memref<9x8x4xf32, #tpu.memory_space<vmem>>, vector<1x8x4xf32>
    %67 = vector.shape_cast %66 : vector<1x8x4xf32> to vector<8x4xf32>
    %cst_52 = arith.constant dense<0.000000e+00> : vector<8x16xf32>
    %68 = tpu.matmul %67, %65, %cst_52 {dimension_numbers = #tpu.dot_dimension_numbers<[1], [0], [0], [1], [0, 0, 1, 1], [], []>} : vector<8x4xf32>, vector<4x16xf32>, vector<8x16xf32> -> vector<8x16xf32>
    %69 = arith.addf %58, %68 : vector<8x16xf32>
    %c0_53 = arith.constant 0 : index
    %c5 = arith.constant 5 : index
    %c0_54 = arith.constant 0 : index
    %c0_55 = arith.constant 0 : index
    %70 = vector.load %arg2[%c0_53, %c5, %c0_54, %c0_55] : memref<1x9x27x16xf32, #tpu.memory_space<vmem>>, vector<1x1x27x16xf32>
    %71 = vector.shape_cast %70 : vector<1x1x27x16xf32> to vector<27x16xf32>
    %cst_56 = arith.constant dense<0.000000e+00> : vector<4x16xf32>
    %72 = tpu.matmul %0, %71, %cst_56 {dimension_numbers = #tpu.dot_dimension_numbers<[1], [0], [0], [1], [0, 0, 1, 1], [], []>} : vector<4x27xf32>, vector<27x16xf32>, vector<4x16xf32> -> vector<4x16xf32>
    %73 = vector.broadcast %1 : vector<4x1xf32> to vector<4x16xf32>
    %74 = arith.addf %72, %73 : vector<4x16xf32>
    %cst_57 = arith.constant 0.000000e+00 : f32
    %75 = vector.broadcast %cst_57 : f32 to vector<4x16xf32>
    %76 = arith.maximumf %74, %75 : vector<4x16xf32>
    %c5_58 = arith.constant 5 : index
    %c0_59 = arith.constant 0 : index
    %c0_60 = arith.constant 0 : index
    %77 = vector.load %arg6[%c5_58, %c0_59, %c0_60] : memref<9x8x4xf32, #tpu.memory_space<vmem>>, vector<1x8x4xf32>
    %78 = vector.shape_cast %77 : vector<1x8x4xf32> to vector<8x4xf32>
    %cst_61 = arith.constant dense<0.000000e+00> : vector<8x16xf32>
    %79 = tpu.matmul %78, %76, %cst_61 {dimension_numbers = #tpu.dot_dimension_numbers<[1], [0], [0], [1], [0, 0, 1, 1], [], []>} : vector<8x4xf32>, vector<4x16xf32>, vector<8x16xf32> -> vector<8x16xf32>
    %80 = arith.addf %69, %79 : vector<8x16xf32>
    %c0_62 = arith.constant 0 : index
    %c6 = arith.constant 6 : index
    %c0_63 = arith.constant 0 : index
    %c0_64 = arith.constant 0 : index
    %81 = vector.load %arg2[%c0_62, %c6, %c0_63, %c0_64] : memref<1x9x27x16xf32, #tpu.memory_space<vmem>>, vector<1x1x27x16xf32>
    %82 = vector.shape_cast %81 : vector<1x1x27x16xf32> to vector<27x16xf32>
    %cst_65 = arith.constant dense<0.000000e+00> : vector<4x16xf32>
    %83 = tpu.matmul %0, %82, %cst_65 {dimension_numbers = #tpu.dot_dimension_numbers<[1], [0], [0], [1], [0, 0, 1, 1], [], []>} : vector<4x27xf32>, vector<27x16xf32>, vector<4x16xf32> -> vector<4x16xf32>
    %84 = vector.broadcast %1 : vector<4x1xf32> to vector<4x16xf32>
    %85 = arith.addf %83, %84 : vector<4x16xf32>
    %cst_66 = arith.constant 0.000000e+00 : f32
    %86 = vector.broadcast %cst_66 : f32 to vector<4x16xf32>
    %87 = arith.maximumf %85, %86 : vector<4x16xf32>
    %88 = vector.broadcast %3 : vector<1x16xf32> to vector<4x16xf32>
    %89 = arith.mulf %87, %88 : vector<4x16xf32>
    %c6_67 = arith.constant 6 : index
    %c0_68 = arith.constant 0 : index
    %c0_69 = arith.constant 0 : index
    %90 = vector.load %arg6[%c6_67, %c0_68, %c0_69] : memref<9x8x4xf32, #tpu.memory_space<vmem>>, vector<1x8x4xf32>
    %91 = vector.shape_cast %90 : vector<1x8x4xf32> to vector<8x4xf32>
    %cst_70 = arith.constant dense<0.000000e+00> : vector<8x16xf32>
    %92 = tpu.matmul %91, %89, %cst_70 {dimension_numbers = #tpu.dot_dimension_numbers<[1], [0], [0], [1], [0, 0, 1, 1], [], []>} : vector<8x4xf32>, vector<4x16xf32>, vector<8x16xf32> -> vector<8x16xf32>
    %93 = arith.addf %80, %92 : vector<8x16xf32>
    %c0_71 = arith.constant 0 : index
    %c7 = arith.constant 7 : index
    %c0_72 = arith.constant 0 : index
    %c0_73 = arith.constant 0 : index
    %94 = vector.load %arg2[%c0_71, %c7, %c0_72, %c0_73] : memref<1x9x27x16xf32, #tpu.memory_space<vmem>>, vector<1x1x27x16xf32>
    %95 = vector.shape_cast %94 : vector<1x1x27x16xf32> to vector<27x16xf32>
    %cst_74 = arith.constant dense<0.000000e+00> : vector<4x16xf32>
    %96 = tpu.matmul %0, %95, %cst_74 {dimension_numbers = #tpu.dot_dimension_numbers<[1], [0], [0], [1], [0, 0, 1, 1], [], []>} : vector<4x27xf32>, vector<27x16xf32>, vector<4x16xf32> -> vector<4x16xf32>
    %97 = vector.broadcast %1 : vector<4x1xf32> to vector<4x16xf32>
    %98 = arith.addf %96, %97 : vector<4x16xf32>
    %cst_75 = arith.constant 0.000000e+00 : f32
    %99 = vector.broadcast %cst_75 : f32 to vector<4x16xf32>
    %100 = arith.maximumf %98, %99 : vector<4x16xf32>
    %c7_76 = arith.constant 7 : index
    %c0_77 = arith.constant 0 : index
    %c0_78 = arith.constant 0 : index
    %101 = vector.load %arg6[%c7_76, %c0_77, %c0_78] : memref<9x8x4xf32, #tpu.memory_space<vmem>>, vector<1x8x4xf32>
    %102 = vector.shape_cast %101 : vector<1x8x4xf32> to vector<8x4xf32>
    %cst_79 = arith.constant dense<0.000000e+00> : vector<8x16xf32>
    %103 = tpu.matmul %102, %100, %cst_79 {dimension_numbers = #tpu.dot_dimension_numbers<[1], [0], [0], [1], [0, 0, 1, 1], [], []>} : vector<8x4xf32>, vector<4x16xf32>, vector<8x16xf32> -> vector<8x16xf32>
    %104 = arith.addf %93, %103 : vector<8x16xf32>
    %c0_80 = arith.constant 0 : index
    %c8 = arith.constant 8 : index
    %c0_81 = arith.constant 0 : index
    %c0_82 = arith.constant 0 : index
    %105 = vector.load %arg2[%c0_80, %c8, %c0_81, %c0_82] : memref<1x9x27x16xf32, #tpu.memory_space<vmem>>, vector<1x1x27x16xf32>
    %106 = vector.shape_cast %105 : vector<1x1x27x16xf32> to vector<27x16xf32>
    %cst_83 = arith.constant dense<0.000000e+00> : vector<4x16xf32>
    %107 = tpu.matmul %0, %106, %cst_83 {dimension_numbers = #tpu.dot_dimension_numbers<[1], [0], [0], [1], [0, 0, 1, 1], [], []>} : vector<4x27xf32>, vector<27x16xf32>, vector<4x16xf32> -> vector<4x16xf32>
    %108 = vector.broadcast %1 : vector<4x1xf32> to vector<4x16xf32>
    %109 = arith.addf %107, %108 : vector<4x16xf32>
    %cst_84 = arith.constant 0.000000e+00 : f32
    %110 = vector.broadcast %cst_84 : f32 to vector<4x16xf32>
    %111 = arith.maximumf %109, %110 : vector<4x16xf32>
    %c8_85 = arith.constant 8 : index
    %c0_86 = arith.constant 0 : index
    %c0_87 = arith.constant 0 : index
    %112 = vector.load %arg6[%c8_85, %c0_86, %c0_87] : memref<9x8x4xf32, #tpu.memory_space<vmem>>, vector<1x8x4xf32>
    %113 = vector.shape_cast %112 : vector<1x8x4xf32> to vector<8x4xf32>
    %cst_88 = arith.constant dense<0.000000e+00> : vector<8x16xf32>
    %114 = tpu.matmul %113, %111, %cst_88 {dimension_numbers = #tpu.dot_dimension_numbers<[1], [0], [0], [1], [0, 0, 1, 1], [], []>} : vector<8x4xf32>, vector<4x16xf32>, vector<8x16xf32> -> vector<8x16xf32>
    %115 = arith.addf %104, %114 : vector<8x16xf32>
    %c0_89 = arith.constant 0 : index
    %c0_90 = arith.constant 0 : index
    %116 = vector.load %arg7[%c0_89, %c0_90] : memref<8x1xf32, #tpu.memory_space<vmem>>, vector<8x1xf32>
    %117 = vector.broadcast %116 : vector<8x1xf32> to vector<8x16xf32>
    %118 = arith.addf %115, %117 : vector<8x16xf32>
    %cst_91 = arith.constant 0.000000e+00 : f32
    %119 = vector.broadcast %cst_91 : f32 to vector<8x16xf32>
    %120 = arith.maximumf %118, %119 : vector<8x16xf32>
    %c0_92 = arith.constant 0 : index
    %c0_93 = arith.constant 0 : index
    %121 = vector.load %arg8[%c0_92, %c0_93] : memref<32x8xf32, #tpu.memory_space<vmem>>, vector<32x8xf32>
    %cst_94 = arith.constant dense<0.000000e+00> : vector<32x16xf32>
    %122 = tpu.matmul %121, %120, %cst_94 {dimension_numbers = #tpu.dot_dimension_numbers<[1], [0], [0], [1], [0, 0, 1, 1], [], []>} : vector<32x8xf32>, vector<8x16xf32>, vector<32x16xf32> -> vector<32x16xf32>
    %c0_95 = arith.constant 0 : index
    %c0_96 = arith.constant 0 : index
    %123 = vector.load %arg9[%c0_95, %c0_96] : memref<32x1xf32, #tpu.memory_space<vmem>>, vector<32x1xf32>
    %124 = vector.broadcast %123 : vector<32x1xf32> to vector<32x16xf32>
    %125 = arith.addf %122, %124 : vector<32x16xf32>
    %c0_97 = arith.constant 0 : index
    %c0_98 = arith.constant 0 : index
    %c0_99 = arith.constant 0 : index
    %126 = vector.load %arg10[%c0_97, %c0_98, %c0_99] : memref<1x32x16xf32, #tpu.memory_space<vmem>>, vector<1x32x16xf32>
    %127 = vector.shape_cast %126 : vector<1x32x16xf32> to vector<32x16xf32>
    %128 = vector.shape_cast %125 : vector<32x16xf32> to vector<1x32x16xf32>
    tpu.vector_store %arg10[%c0_97, %c0_98, %c0_99], %128 {strides = array<i32>} : memref<1x32x16xf32, #tpu.memory_space<vmem>>, vector<1x32x16xf32>,
    return
  }
  func.func @transform_0(%arg0: i32, %arg1: i32) -> (i32, i32, i32, i32) {
    %c0_i32 = arith.constant 0 : i32
    %c0_i32_0 = arith.constant 0 : i32
    %c0_i32_1 = arith.constant 0 : i32
    return %arg0, %c0_i32, %c0_i32_0, %arg1 : i32, i32, i32, i32
  }
  func.func @transform_1(%arg0: i32, %arg1: i32) -> (i32, i32) {
    %c0_i32 = arith.constant 0 : i32
    %c0_i32_0 = arith.constant 0 : i32
    return %c0_i32, %arg1 : i32, i32
  }
  func.func @transform_2(%arg0: i32, %arg1: i32) -> (i32, i32) {
    %c0_i32 = arith.constant 0 : i32
    %c0_i32_0 = arith.constant 0 : i32
    %c0_i32_1 = arith.constant 0 : i32
    return %c0_i32, %c0_i32_0 : i32, i32
  }
  func.func @transform_3(%arg0: i32, %arg1: i32) -> (i32, i32) {
    %c0_i32 = arith.constant 0 : i32
    %c0_i32_0 = arith.constant 0 : i32
    %c0_i32_1 = arith.constant 0 : i32
    return %c0_i32, %c0_i32_0 : i32, i32
  }
  func.func @transform_4(%arg0: i32, %arg1: i32) -> (i32, i32, i32) {
    %c0_i32 = arith.constant 0 : i32
    %c0_i32_0 = arith.constant 0 : i32
    %c0_i32_1 = arith.constant 0 : i32
    %c0_i32_2 = arith.constant 0 : i32
    return %c0_i32, %c0_i32_0, %c0_i32_1 : i32, i32, i32
  }
  func.func @transform_5(%arg0: i32, %arg1: i32) -> (i32, i32) {
    %c0_i32 = arith.constant 0 : i32
    %c0_i32_0 = arith.constant 0 : i32
    %c0_i32_1 = arith.constant 0 : i32
    return %c0_i32, %c0_i32_0 : i32, i32
  }
  func.func @transform_6(%arg0: i32, %arg1: i32) -> (i32, i32) {
    %c0_i32 = arith.constant 0 : i32
    %c0_i32_0 = arith.constant 0 : i32
    %c0_i32_1 = arith.constant 0 : i32
    return %c0_i32, %c0_i32_0 : i32, i32
  }
  func.func @transform_7(%arg0: i32, %arg1: i32) -> (i32, i32) {
    %c0_i32 = arith.constant 0 : i32
    %c0_i32_0 = arith.constant 0 : i32
    %c0_i32_1 = arith.constant 0 : i32
    return %c0_i32, %c0_i32_0 : i32, i32
  }
  func.func @transform_8(%arg0: i32, %arg1: i32) -> (i32, i32, i32) {
    %c0_i32 = arith.constant 0 : i32
    %c0_i32_0 = arith.constant 0 : i32
    return %arg0, %c0_i32, %arg1 : i32, i32, i32
  }
}

</mosaic_0001>

<bundles_post_ra>
// kernel: conv_stem_forward.1
= control target key start
LH: loop header
LB: loop body
LE: loop exit
PB: predicated region body
PF: predicated region fallthrough
CT: control target
= control target key end

     0   :  { %s2523_s27 = smov 0   ;;  %s2525_s28 = smov 0   ;;  %s2807_s0 = inlined_call_operand.vmem [shape: f32[2,9,27,16], index: 0, kind: input, shape index: {}]   ;;  %s2808_s1 = inlined_call_operand.vmem [shape: f32[2,16], index: 1, kind: input, shape index: {}]   ;;  %s2809_s2 = inlined_call_operand.vmem [shape: f32[4,27], index: 2, kind: input, shape index: {}]   ;;  %s2810_s3 = inlined_call_operand.vmem [shape: f32[4,1], index: 3, kind: input, shape index: {}]   ;;  %s2811_s4 = inlined_call_operand.vmem [shape: f32[9,8,4], index: 4, kind: input, shape index: {}]   ;;  %s2812_s5 = inlined_call_operand.vmem [shape: f32[8,1], index: 5, kind: input, shape index: {}]   ;;  %s2813_s6 = inlined_call_operand.vmem [shape: f32[32,8], index: 6, kind: input, shape index: {}]   ;;  %s2814_s7 = inlined_call_operand.vmem [shape: f32[32,1], index: 7, kind: input, shape index: {}]   ;;  %s2815_s8 = inlined_call_operand.vmem [shape: f32[2,32,16], index: 8, kind: output, shape index: {}]  }
   0x1   :  { %s2527_s29 = smov 0  }
   0x2 LB: > { %s30_s30 = sadd.s32 1, %s2467_s28  ;;  %p2045_p0 = scmp.ge.s32.totalorder %s2471_s29, 1  ;;  %s2471_s29 = sphi %s2527_s29, %s18_s29   ;;  %s2467_s28 = sphi %s2525_s28, %s2819_s28   ;;  %s2463_s27 = sphi %s2523_s27, %s2818_s27  }
   0x3   : > { %p32_p1 = scmp.ge.s32.totalorder %s30_s30, 2  ;;  %p290_p2 = scmp.lt.s32.totalorder %s2471_s29, 3 }
   0x5   : > { %s2821_s30 = smov (%p32_p1, %s30_s30), 0  ;;  %p291_p3 = pnand %p2045_p0, %p290_p2 }
   0x6   : > { %p334_p4 = scmp.lt.s32.totalorder (!%p291_p3), %s2463_s27, 1  ;;  %v2473_v0 = vmov (!%p291_p3), 0.0|0.0   ;;  %vm2474_vm0 = vmmov (!%p291_p3), 0   ;;  %v2475_v1 = vmov (!%p291_p3), 0.0   ;;  %v355_v2 = vld [vmem:[%s2810_s3] sm:$0xf] (!%p291_p3) }
   0x7   : > { %294 = sbr.rel (%p291_p3) target bundleno = 2269 (0x8dd), region = 52  ;;  %2354 = vmatprep.subr.bf16.mxu0 (!%p291_p3), %v2473_v0  ;;  %2361 = vmatprep.subr.bf16.mxu1 (!%p291_p3), %v2473_v0  ;;  %v2476_v3 = vmov (!%p291_p3), 0   ;;  %v1802_v4 = vld [vmem:[%s2812_s5] sm:$0xff] (!%p291_p3)  ;;  %vm371_vm1 = vcmask (!%p291_p3), 1042432   ;;  %v1816_v15 = vld [vmem:[%s2814_s7 + $0x10] sm:$0xff] (!%p291_p3)  ;;  %vm2477_vm2 = vmmov (!%p291_p3), 1  }
   0x8   : > { %2210 = vmatprep.mubr.msk.f32.mxu0 (!%p291_p3), %vm2474_vm0, %v2475_v1  ;;  %2221 = vmatprep.mubr.msk.f32.mxu1 (!%p291_p3), %vm2474_vm0, %v2475_v1  ;;  %vm2573_vm3 = vmpackc.low (!%p291_p3), %vm371_vm1, %vm2477_vm2  ;;  %v2583_v19 = vld [vmem:[%s2809_s2] sm:$0xf] (!%p291_p3)  ;;  %vm367_vm4 = vcmask (!%p291_p3), 220160   ;;  %vm543_vm5 = vcmask (!%p291_p3), 1043456   ;;  %v2059_v35 = vld [vmem:[%s2811_s4 + $0x8] sm:$0xff] (!%p291_p3)  ;;  %vm539_vm6 = vcmask (!%p291_p3), 31744  }
   0x9   : > { %2447 = vset.pattern.permute.xlu0 (!%p291_p3), %v2476_v3  ;;  %2448 = vset.pattern.permute.xlu1 (!%p291_p3), %v2476_v3  ;;  %v2051_v25 = vld [vmem:[%s2808_s1] ss:$0 sm:$0xff] (!%p291_p3)  ;;  %v2609_v31 = vld [vmem:[%s2808_s1 + $0x1] ss:$0 sm:$0xff] (!%p291_p3)  ;;  %v2070_v54 = vld [vmem:[%s2811_s4 + $0x10] sm:$0xff] (!%p291_p3)  ;;  %vm1838_vm7 = vcmask (!%p291_p3), 64512  }
   0xa   : > { %364 = vperm.xlu0 (!%p291_p3), %2447, %v355_v2   ;;  %v456_v40 = vld [vmem:[%s2811_s4] sm:$0xff] (!%p291_p3)  ;;  %vm1936_vm8 = vcmask (!%p291_p3), 130048  }
   0xb   : > { %v1814_v17 = vld [vmem:[%s2814_s7] sm:$0xff] (!%p291_p3) }
   0xc   : > { %1820 = vperm.xlu1 (!%p291_p3), %2448, %v1814_v17  }
   0xe   : > { %s2823_s27 = smov (!%p334_p4, %s2463_s27), 1  ;;  %1805 = vperm.xlu0 %2447, %v1802_v4  }
   0xf   : > { %s2417_s11 = smul.u32 288, %s2823_s27  ;;  %s2133_s22 = sshll.u32 %s2823_s27, 5 }
  0x10   : > { %s353_s24 = scalar_lea.vmem %s2815_s8, %s2133_s22 }
  0x11   : > { %s2559_s16 = scalar_lea.vmem %s2807_s0, %s2417_s11 }
  0x12   : > { %v358_v5 = vld [vmem:[%s2559_s16] sm:$0xff]  ;;  %v359_v6 = vld [vmem:[%s2559_s16 + $0x8] sm:$0xff]  ;;  %v360_v10 = vld [vmem:[%s2559_s16 + $0x10] sm:$0xff]  ;;  %1830 = vperm.xlu0 %2447, %v1816_v15  }
  0x13   : > { %v2053_v7 = vld [vmem:[%s2559_s16 + $0x20] sm:$0xff]  ;;  %v2355_v8 = vpack.c.bf16 %v359_v6, %v358_v5  ;;  %v2054_v9 = vld [vmem:[%s2559_s16 + $0x28] sm:$0xff]  ;;  %v361_v11 = vld [vmem:[%s2559_s16 + $0x18] sm:$0x7] }
  0x14   : > { %v2362_v12 = vpack.c.bf16 %v2054_v9, %v2053_v7  ;;  %v2055_v13 = vld [vmem:[%s2559_s16 + $0x30] sm:$0xff]  ;;  %v2056_v14 = vld [vmem:[%s2559_s16 + $0x38] sm:$0x7]  ;;  %v2358_v16 = vpack.c.bf16 %v361_v11, %v360_v10  ;;  %v2064_v29 = vld [vmem:[%s2559_s16 + $0x40] sm:$0xff] }
  0x15   : > { %2356 = vmatpush3.bf16.msra.mxu0 %v2355_v8  ;;  %v2365_v18 = vpack.c.bf16 %v2056_v14, %v2055_v13  ;;  %v2065_v30 = vld [vmem:[%s2559_s16 + $0x48] sm:$0xff]  ;;  %v2066_v38 = vld [vmem:[%s2559_s16 + $0x50] sm:$0xff]  ;;  %v2067_v39 = vld [vmem:[%s2559_s16 + $0x58] sm:$0x7] }
  0x16   : > { %2363 = vmatpush3.bf16.msra.mxu1 %v2362_v12  ;;  %2357 = vmatprep.subr.bf16.mxu0 %v2473_v0  ;;  %v2369_v36 = vpack.c.bf16 %v2065_v30, %v2064_v29  ;;  %v2372_v41 = vpack.c.bf16 %v2067_v39, %v2066_v38  ;;  %v2073_v50 = vld [vmem:[%s2559_s16 + $0x60] sm:$0xff]  ;;  %v2074_v51 = vld [vmem:[%s2559_s16 + $0x68] sm:$0xff]  ;;  %v2075_v56 = vld [vmem:[%s2559_s16 + $0x70] sm:$0xff] }
  0x17   : > { %2364 = vmatprep.subr.bf16.mxu1 %v2473_v0  ;;  %v2376_v55 = vpack.c.bf16 %v2074_v51, %v2073_v50  ;;  %v2076_v57 = vld [vmem:[%s2559_s16 + $0x78] sm:$0x7]  ;;  %v2082_v3 = vld [vmem:[%s2559_s16 + $0x80] sm:$0xff]  ;;  %v2083_v4 = vld [vmem:[%s2559_s16 + $0x88] sm:$0xff] }
  0x18   : > { %v2379_v58 = vpack.c.bf16 %v2076_v57, %v2075_v56  ;;  %v2079_v7 = vld [vmem:[%s2811_s4 + $0x18] sm:$0xff]  ;;  %v2383_v8 = vpack.c.bf16 %v2083_v4, %v2082_v3  ;;  %v2084_v9 = vld [vmem:[%s2559_s16 + $0x90] sm:$0xff]  ;;  %v2097_v39 = vld [vmem:[%s2811_s4 + $0x28] sm:$0xff] }
  0x19   : > { %2360 = vmatpush3.bf16.msk.msra.mxu0 %vm2573_vm3, %v2358_v16  ;;  %v2085_v10 = vld [vmem:[%s2559_s16 + $0x98] sm:$0x7]  ;;  %v2091_v16 = vld [vmem:[%s2559_s16 + $0xa0] sm:$0xff]  ;;  %v2110_v51 = vld [vmem:[%s2559_s16 + $0xe8] sm:$0xff] }
  0x1a   : > { %2367 = vmatpush3.bf16.msk.msra.mxu1 %vm2573_vm3, %v2365_v18  ;;  %2224 = vmatprep.subr.mxu0 %v2475_v1  ;;  %v2386_v11 = vpack.c.bf16 %v2085_v10, %v2084_v9  ;;  %v2092_v18 = vld [vmem:[%s2559_s16 + $0xa8] sm:$0xff]  ;;  %v2109_v50 = vld [vmem:[%s2559_s16 + $0xe0] sm:$0xff]  ;;  %v2111_v56 = vld [vmem:[%s2559_s16 + $0xf0] sm:$0xff] }
  0x1b   : > { %2229 = vmatprep.subr.mxu1 %v2475_v1  ;;  %v2112_v57 = vld [vmem:[%s2559_s16 + $0xf8] sm:$0x7] }
  0x1c   : > { %2211 = vmatmul.mubr.msk.f32.vlgmr.msra.gmra.mrb[0].mxu0 %vm367_vm4, %v2583_v19 }
  0x1d   : > { %2222 = vmatmul.mubr.msk.f32.vlgmr.msra.gmra.mrb[0].mxu1 %vm367_vm4, %v2583_v19  ;;  %2226 = vmatprep.mubr.msk.f32.mxu0 %vm2474_vm0, %v2475_v1 }
  0x1e   : > { %2231 = vmatprep.mubr.msk.f32.mxu1 %vm2474_vm0, %v2475_v1 }
  0x89   : > { %v2597_v20 = vpop.permute.xlu0 %364 }
  0xef   : > { %v441_v21 = vpop.f32.mrb[0].mxu0 }
  0xf0   : > { %v442_v22 = vadd.f32 %v441_v21, %v2597_v20  ;;  %v531_v23 = vpop.f32.mrb[0].mxu1  ;;  %v2212_v24 = vpop.f32.mrb[1].mxu0 }
  0xf1   : > { %v532_v26 = vadd.f32 %v531_v23, %v2597_v20  ;;  %v2223_v27 = vpop.f32.mrb[1].mxu1  ;;  %v2088_v24 = vld [vmem:[%s2811_s4 + $0x20] sm:$0xff] }
  0xf2   : > { %v445_v28 = vmax.f32 %v442_v22, 0.0  ;;  %v2094_v27 = vld [vmem:[%s2559_s16 + $0xb8] sm:$0x7] }
  0xf3   : > { %v535_v32 = vmax.f32 %v532_v26, 0.0  ;;  %v2093_v26 = vld [vmem:[%s2559_s16 + $0xb0] sm:$0xff] }
  0xf4   : > { %v450_v33 = vmul.f32 %v2051_v25, %v445_v28  ;;  %v2393_v28 = vpack.c.bf16 %v2094_v27, %v2093_v26  ;;  %v1811_v26 = vld [vmem:[%s2813_s6 + $0x8] sm:$0xff]  ;;  %v1812_v27 = vld [vmem:[%s2813_s6 + $0x10] sm:$0xff] }
  0xf5   : > { %v536_v34 = vmul.f32 %v2051_v25, %v535_v32 }
  0xf6   : > { %v455_v37 = vmul.f32 %v2609_v31, %v450_v33 }
  0xf7   : > { %2225 = vmatpush3.msk.msra.mxu0 %vm543_vm5, %v536_v34  ;;  %v2100_v34 = vld [vmem:[%s2559_s16 + $0xc0] sm:$0xff] }
  0xf8   : > { %2227 = vmatmul.mubr.msk.f32.vlgmr.msra.gmra.mrb[2].mxu0 %vm539_vm6, %v2059_v35  ;;  %2368 = vmatprep.subr.bf16.mxu0 %v2473_v0  ;;  %v2101_v35 = vld [vmem:[%s2559_s16 + $0xc8] sm:$0xff] }
  0xf9   : > { %2230 = vmatpush3.msk.msra.mxu1 %vm543_vm5, %v455_v37  ;;  %2370 = vmatpush3.bf16.msra.mxu0 %v2369_v36 }
  0xfa   : > { %2232 = vmatmul.mubr.msk.f32.vlgmr.msra.gmra.mrb[2].mxu1 %vm539_vm6, %v456_v40  ;;  %2371 = vmatprep.subr.bf16.mxu0 %v2473_v0  ;;  %v2397_v40 = vpack.c.bf16 %v2101_v35, %v2100_v34 }
  0xfb   : > { %2242 = vmatprep.mubr.msk.f32.mxu0 %vm2474_vm0, %v2475_v1  ;;  %2245 = vmatprep.subr.mxu1 %v2475_v1 }
  0xfc   : > { %2247 = vmatprep.mubr.msk.f32.mxu1 %vm2474_vm0, %v2475_v1 }
  0xfd   : > { %2374 = vmatpush3.bf16.msk.msra.mxu0 %vm2573_vm3, %v2372_v41  ;;  %v2102_v41 = vld [vmem:[%s2559_s16 + $0xd0] sm:$0xff] }
  0xfe   : > { %2261 = vmatprep.subr.mxu0 %v2475_v1 }
 0x100   : > { %2243 = vmatmul.mubr.msk.f32.vlgmr.msra.gmra.mrb[4].mxu0 %vm367_vm4, %v2583_v19 }
 0x101   : > { %2263 = vmatprep.mubr.msk.f32.mxu0 %vm2474_vm0, %v2475_v1 }
 0x1cb   : > { %v613_v42 = vpop.f32.mrb[2].mxu0 }
 0x1cc   : > { %v2228_v43 = vpop.f32.mrb[3].mxu0 }
 0x1cd   : > { %v689_v44 = vpop.f32.mrb[2].mxu1 }
 0x1ce   : > { %v690_v45 = vadd.f32 %v689_v44, %v613_v42  ;;  %v2233_v46 = vpop.f32.mrb[3].mxu1  ;;  %v2103_v42 = vld [vmem:[%s2559_s16 + $0xd8] sm:$0x7] }
 0x1cf   : > { %v2400_v43 = vpack.c.bf16 %v2103_v42, %v2102_v41 }
 0x1d3   : > { %v767_v47 = vpop.f32.mrb[4].mxu0 }
 0x1d4   : > { %v768_v48 = vadd.f32 %v767_v47, %v2597_v20  ;;  %v2244_v49 = vpop.f32.mrb[5].mxu0 }
 0x1d6   : > { %v771_v52 = vmax.f32 %v768_v48, 0.0 }
 0x1d8   : > { %v772_v53 = vmul.f32 %v2051_v25, %v771_v52  ;;  %v2390_v25 = vpack.c.bf16 %v2092_v18, %v2091_v16 }
 0x1da   : > { %2246 = vmatpush3.msk.msra.mxu1 %vm543_vm5, %v772_v53 }
 0x1db   : > { %2248 = vmatmul.mubr.msk.f32.vlgmr.msra.gmra.mrb[4].mxu1 %vm539_vm6, %v2070_v54  ;;  %2375 = vmatprep.subr.bf16.mxu1 %v2473_v0  ;;  %v2106_v54 = vld [vmem:[%s2811_s4 + $0x30] sm:$0xff] }
 0x1dc   : > { %2377 = vmatpush3.bf16.msra.mxu1 %v2376_v55  ;;  %2258 = vmatprep.mubr.msk.f32.mxu1 %vm2474_vm0, %v2475_v1  ;;  %v2404_v55 = vpack.c.bf16 %v2110_v51, %v2109_v50 }
 0x1dd   : > { %2378 = vmatprep.subr.bf16.mxu1 %v2473_v0 }
 0x1e0   : > { %2381 = vmatpush3.bf16.msk.msra.mxu1 %vm2573_vm3, %v2379_v58  ;;  %v2407_v58 = vpack.c.bf16 %v2112_v57, %v2111_v56 }
 0x1e1   : > { %2277 = vmatprep.subr.mxu1 %v2475_v1 }
 0x1e3   : > { %2259 = vmatmul.mubr.msk.f32.vlgmr.msra.gmra.mrb[6].mxu1 %vm367_vm4, %v2583_v19 }
 0x1e4   : > { %2279 = vmatprep.mubr.msk.f32.mxu1 %vm2474_vm0, %v2475_v1 }
 0x2ae   : > { %v847_v59 = vpop.f32.mrb[4].mxu1 }
 0x2af   : > { %v851_v60 = vadd.f32 %v847_v59, %v690_v45  ;;  %v2249_v61 = vpop.f32.mrb[5].mxu1 }
 0x2b6   : > { %v926_v62 = vpop.f32.mrb[6].mxu1 }
 0x2b7   : > { %v927_v63 = vadd.f32 %v926_v62, %v2597_v20  ;;  %v2260_v2 = vpop.f32.mrb[7].mxu1  ;;  %v2118_v62 = vld [vmem:[%s2559_s16 + $0x100] sm:$0xff] }
 0x2b9   : > { %v930_v5 = vmax.f32 %v927_v63, 0.0  ;;  %v2119_v63 = vld [vmem:[%s2559_s16 + $0x108] sm:$0xff] }
 0x2bb   : > { %v931_v6 = vmul.f32 %v2609_v31, %v930_v5  ;;  %v2115_v5 = vld [vmem:[%s2811_s4 + $0x38] sm:$0xff] }
 0x2bd   : > { %2262 = vmatpush3.msk.msra.mxu0 %vm543_vm5, %v931_v6  ;;  %v2411_v6 = vpack.c.bf16 %v2119_v63, %v2118_v62 }
 0x2be   : > { %2264 = vmatmul.mubr.msk.f32.vlgmr.msra.gmra.mrb[6].mxu0 %vm539_vm6, %v2079_v7  ;;  %2382 = vmatprep.subr.bf16.mxu0 %v2473_v0  ;;  %v2120_v7 = vld [vmem:[%s2559_s16 + $0x110] sm:$0xff] }
 0x2bf   : > { %2384 = vmatpush3.bf16.msra.mxu0 %v2383_v8  ;;  %2274 = vmatprep.mubr.msk.f32.mxu0 %vm2474_vm0, %v2475_v1  ;;  %v2121_v8 = vld [vmem:[%s2559_s16 + $0x118] sm:$0x7] }
 0x2c0   : > { %2385 = vmatprep.subr.bf16.mxu0 %v2473_v0  ;;  %v2414_v9 = vpack.c.bf16 %v2121_v8, %v2120_v7 }
 0x2c3   : > { %2388 = vmatpush3.bf16.msk.msra.mxu0 %vm2573_vm3, %v2386_v11 }
 0x2c4   : > { %2293 = vmatprep.subr.mxu0 %v2475_v1 }
 0x2c6   : > { %2275 = vmatmul.mubr.msk.f32.vlgmr.msra.gmra.mrb[8].mxu0 %vm367_vm4, %v2583_v19 }
 0x2c7   : > { %2295 = vmatprep.mubr.msk.f32.mxu0 %vm2474_vm0, %v2475_v1 }
 0x391   : > { %v1006_v12 = vpop.f32.mrb[6].mxu0 }
 0x392   : > { %v1010_v13 = vadd.f32 %v1006_v12, %v851_v60  ;;  %v2265_v14 = vpop.f32.mrb[7].mxu0 }
 0x399   : > { %v1085_v15 = vpop.f32.mrb[8].mxu0 }
 0x39a   : > { %v1086_v21 = vadd.f32 %v1085_v15, %v2597_v20  ;;  %v2276_v22 = vpop.f32.mrb[9].mxu0 }
 0x39c   : > { %v1089_v23 = vmax.f32 %v1086_v21, 0.0 }
 0x39e   : > { %2278 = vmatpush3.msk.msra.mxu1 %vm543_vm5, %v1089_v23  ;;  %v1806_v23 = vpop.permute.xlu0 %1805 }
 0x39f   : > { %2280 = vmatmul.mubr.msk.f32.vlgmr.msra.gmra.mrb[8].mxu1 %vm539_vm6, %v2088_v24  ;;  %2389 = vmatprep.subr.bf16.mxu1 %v2473_v0 }
 0x3a0   : > { %2391 = vmatpush3.bf16.msra.mxu1 %v2390_v25  ;;  %2290 = vmatprep.mubr.msk.f32.mxu1 %vm2474_vm0, %v2475_v1 }
 0x3a1   : > { %2392 = vmatprep.subr.bf16.mxu1 %v2473_v0 }
 0x3a4   : > { %2395 = vmatpush3.bf16.msk.msra.mxu1 %vm2573_vm3, %v2393_v28  ;;  %v1813_v28 = vld [vmem:[%s2813_s6 + $0x18] sm:$0xff] }
 0x3a5   : > { %2309 = vmatprep.subr.mxu1 %v2475_v1 }
 0x3a7   : > { %2291 = vmatmul.mubr.msk.f32.vlgmr.msra.gmra.mrb[10].mxu1 %vm367_vm4, %v2583_v19 }
 0x3a8   : > { %2311 = vmatprep.mubr.msk.f32.mxu1 %vm2474_vm0, %v2475_v1 }
 0x472   : > { %v1164_v29 = vpop.f32.mrb[8].mxu1 }
 0x473   : > { %v1168_v30 = vadd.f32 %v1164_v29, %v1010_v13  ;;  %v2281_v32 = vpop.f32.mrb[9].mxu1  ;;  %v1821_v29 = vpop.permute.xlu1 %1820 }
 0x47a   : > { %v1243_v33 = vpop.f32.mrb[10].mxu1 }
 0x47b   : > { %v1244_v36 = vadd.f32 %v1243_v33, %v2597_v20  ;;  %v2292_v37 = vpop.f32.mrb[11].mxu1 }
 0x47d   : > { %v1247_v38 = vmax.f32 %v1244_v36, 0.0 }
 0x47f   : > { %2294 = vmatpush3.msk.msra.mxu0 %vm543_vm5, %v1247_v38  ;;  %v1831_v38 = vpop.permute.xlu0 %1830 }
 0x480   : > { %2296 = vmatmul.mubr.msk.f32.vlgmr.msra.gmra.mrb[10].mxu0 %vm539_vm6, %v2097_v39  ;;  %2396 = vmatprep.subr.bf16.mxu0 %v2473_v0 }
 0x481   : > { %2398 = vmatpush3.bf16.msra.mxu0 %v2397_v40  ;;  %2306 = vmatprep.mubr.msk.f32.mxu0 %vm2474_vm0, %v2475_v1 }
 0x482   : > { %2399 = vmatprep.subr.bf16.mxu0 %v2473_v0 }
 0x485   : > { %2402 = vmatpush3.bf16.msk.msra.mxu0 %vm2573_vm3, %v2400_v43 }
 0x486   : > { %2325 = vmatprep.subr.mxu0 %v2475_v1 }
 0x488   : > { %2307 = vmatmul.mubr.msk.f32.vlgmr.msra.gmra.mrb[12].mxu0 %vm367_vm4, %v2583_v19 }
 0x489   : > { %2327 = vmatprep.mubr.msk.f32.mxu0 %vm2474_vm0, %v2475_v1 }
 0x553   : > { %v1322_v44 = vpop.f32.mrb[10].mxu0 }
 0x554   : > { %v1326_v45 = vadd.f32 %v1322_v44, %v1168_v30  ;;  %v2297_v46 = vpop.f32.mrb[11].mxu0 }
 0x55b   : > { %v1401_v47 = vpop.f32.mrb[12].mxu0 }
 0x55c   : > { %v1402_v48 = vadd.f32 %v1401_v47, %v2597_v20  ;;  %v2308_v49 = vpop.f32.mrb[13].mxu0 }
 0x55e   : > { %v1405_v52 = vmax.f32 %v1402_v48, 0.0 }
 0x560   : > { %v1406_v53 = vmul.f32 %v2609_v31, %v1405_v52 }
 0x562   : > { %2310 = vmatpush3.msk.msra.mxu1 %vm543_vm5, %v1406_v53 }
 0x563   : > { %2312 = vmatmul.mubr.msk.f32.vlgmr.msra.gmra.mrb[12].mxu1 %vm539_vm6, %v2106_v54  ;;  %2403 = vmatprep.subr.bf16.mxu1 %v2473_v0 }
 0x564   : > { %2405 = vmatpush3.bf16.msra.mxu1 %v2404_v55  ;;  %2322 = vmatprep.mubr.msk.f32.mxu1 %vm2474_vm0, %v2475_v1 }
 0x565   : > { %2406 = vmatprep.subr.bf16.mxu1 %v2473_v0 }
 0x568   : > { %2409 = vmatpush3.bf16.msk.msra.mxu1 %vm2573_vm3, %v2407_v58 }
 0x569   : > { %2341 = vmatprep.subr.mxu1 %v2475_v1 }
 0x56b   : > { %2323 = vmatmul.mubr.msk.f32.vlgmr.msra.gmra.mrb[14].mxu1 %vm367_vm4, %v2583_v19 }
 0x56c   : > { %2343 = vmatprep.mubr.msk.f32.mxu1 %vm2474_vm0, %v2475_v1 }
 0x636   : > { %v1481_v31 = vpop.f32.mrb[12].mxu1 }
 0x637   : > { %v1485_v59 = vadd.f32 %v1481_v31, %v1326_v45  ;;  %v2313_v60 = vpop.f32.mrb[13].mxu1 }
 0x63e   : > { %v1560_v61 = vpop.f32.mrb[14].mxu1 }
 0x63f   : > { %v1561_v2 = vadd.f32 %v1560_v61, %v2597_v20  ;;  %v2324_v3 = vpop.f32.mrb[15].mxu1 }
 0x641   : > { %v1564_v4 = vmax.f32 %v1561_v2, 0.0 }
 0x643   : > { %2326 = vmatpush3.msk.msra.mxu0 %vm543_vm5, %v1564_v4 }
 0x644   : > { %2328 = vmatmul.mubr.msk.f32.vlgmr.msra.gmra.mrb[14].mxu0 %vm539_vm6, %v2115_v5  ;;  %2410 = vmatprep.subr.bf16.mxu0 %v2473_v0 }
 0x645   : > { %2412 = vmatpush3.bf16.msra.mxu0 %v2411_v6  ;;  %2338 = vmatprep.mubr.msk.f32.mxu0 %vm2474_vm0, %v2475_v1  ;;  %v2124_v1 = vld [vmem:[%s2811_s4 + $0x40] sm:$0xff] }
 0x646   : > { %2413 = vmatprep.subr.bf16.mxu0 %v2473_v0  ;;  %v1810_v0 = vld [vmem:[%s2813_s6] sm:$0xff] }
 0x649   : > { %2416 = vmatpush3.bf16.msk.msra.mxu0 %vm2573_vm3, %v2414_v9 }
 0x64c   : > { %2339 = vmatmul.mubr.msk.f32.vlgmr.msra.gmra.mrb[16].mxu0 %vm367_vm4, %v2583_v19  ;;  %v1815_v19 = vld [vmem:[%s2814_s7 + $0x8] sm:$0xff] }
 0x64d   : > { %1825 = vperm.xlu1 %2448, %v1815_v19  }
 0x6cc   : > { %v1826_v30 = vpop.permute.xlu1 %1825 }
 0x717   : > { %v1639_v10 = vpop.f32.mrb[14].mxu0 }
 0x718   : > { %v1643_v11 = vadd.f32 %v1639_v10, %v1485_v59  ;;  %v2329_v12 = vpop.f32.mrb[15].mxu0 }
 0x71f   : > { %v1718_v13 = vpop.f32.mrb[16].mxu0 }
 0x720   : > { %v1719_v14 = vadd.f32 %v1718_v13, %v2597_v20  ;;  %v2340_v15 = vpop.f32.mrb[17].mxu0  ;;  %v1817_v20 = vld [vmem:[%s2814_s7 + $0x18] sm:$0xff] }
 0x721   : > { %1835 = vperm.xlu1 %2448, %v1817_v20  }
 0x722   : > { %v1722_v16 = vmax.f32 %v1719_v14, 0.0 }
 0x724   : > { %2342 = vmatpush3.msk.msra.mxu1 %vm543_vm5, %v1722_v16 }
 0x725   : > { %2344 = vmatmul.mubr.msk.f32.vlgmr.msra.gmra.mrb[16].mxu1 %vm539_vm6, %v2124_v1 }
 0x726   : > { %2348 = vmatprep.mubr.msk.f32.mxu1 %vm1838_vm7, %v1810_v0 }
 0x7a0   : > { %v1836_v36 = vpop.permute.xlu1 %1835 }
 0x7f8   : > { %v1797_v18 = vpop.f32.mrb[16].mxu1 }
 0x7f9   : > { %v1801_v21 = vadd.f32 %v1797_v18, %v1643_v11  ;;  %v2345_v22 = vpop.f32.mrb[17].mxu1 }
 0x7fb   : > { %v1808_v24 = vadd.f32 %v1806_v23, %v1801_v21 }
 0x7fd   : > { %v1809_v25 = vmax.f32 %v1808_v24, 0.0 }
 0x7ff   : > { %2346 = vmatprep.subr.mxu1 %v1809_v25 }
 0x800   : > { %2347 = vmatpush3.msra.mxu1 %v1809_v25 }
 0x801   : > { %2349 = vmatmul.mubr.msk.f32.vlgmr.msra.gmra.mrb[18].mxu1 %vm1838_vm7, %v1811_v26 }
 0x802   : > { %2351 = vmatprep.mubr.msk.f32.mxu1 %vm1838_vm7, %v1812_v27 }
 0x805   : > { %2352 = vmatmul.mubr.msk.f32.gmra.mrb[20].mxu1 %vm1838_vm7, %v1813_v28 }
 0x8d4   : > { %v2350_v32 = vpop.f32.mrb[18].mxu1 }
 0x8d5   : > { %v1923_v33 = vadd.f32 %v2350_v32, %v1826_v30  ;;  %v1917_v34 = vpop.f32.mrb[19].mxu1 }
 0x8d6   : > { %v1918_v35 = vadd.f32 %v1917_v34, %v1821_v29 }
 0x8d7   : > { %1938 = vst.msk [vmem:[%s353_s24 + $0x8] sm:$0xff] %vm1936_vm8, %v1923_v33 }
 0x8d8   : > { %1937 = vst.msk [vmem:[%s353_s24] sm:$0xff] %vm1936_vm8, %v1918_v35  ;;  %v2353_v37 = vpop.f32.mrb[20].mxu1 }
 0x8d9   : > { %v1933_v39 = vadd.f32 %v2353_v37, %v1836_v36  ;;  %v1927_v40 = vpop.f32.mrb[21].mxu1 }
 0x8da   : > { %v1928_v41 = vadd.f32 %v1927_v40, %v1831_v38 }
 0x8db   : > { %1940 = vst.msk [vmem:[%s353_s24 + $0x18] sm:$0xff] %vm1936_vm8, %v1933_v39 }
 0x8dc   : > { %1939 = vst.msk [vmem:[%s353_s24 + $0x10] sm:$0xff] %vm1936_vm8, %v1928_v41 }
 0x8dd PF: > { %s18_s29 = sadd.s32 1, %s2471_s29   ;;  %s2818_s27 = smov %s2467_s28 }
 0x8de   : > { %p15_p5 = scmp.ge.s32.totalorder %s18_s29, 4   ;;  %s2819_s28 = smov %s2821_s30 }
 0x8e0   :  { %17 = sbr.rel (!%p15_p5) target bundleno = 2 (0x2), region = 101 }

</bundles_post_ra>
